<compile_context>
chip_gen: v6e
topology: v6e:2x2x1
jax: 0.10.0
libtpu: 0.0.40
codegen_flags: <defaults>
</compile_context>

<pallas_src>
import functools

import jax
import jax.numpy as jnp
import numpy as np
from jax.experimental import pallas as pl
from jax.experimental.pallas import tpu as pltpu

NVARS = 3            # conserved vars: (density D, energy tau, momentum S)
LANE = 128           # TPU lane width
CHUNK = 8            # sublanes per inner strip == one f32 vreg per intermediate
DEFAULT_CELLS_PER_BLOCK = 131072       # 1024 sublanes -> ~21 MiB double-buffered
VMEM_LIMIT_BYTES = 32 * 1024 * 1024    # fits v5e (128 MiB phys) / v6e / v7x (64 MiB phys)


def _hllc_kernel(p_ref, u_ref, f_ref, c_ref, out_ref, *, approx_recip):
    # p_ref: (4, S, 128)  rows = (P[.,1,0], P[.,1,1], P[.,2,0], P[.,2,1])
    # u_ref/f_ref: (6, S, 128)  row = var*2 + side
    # c_ref: (2, S, 128)  row 0 = cmax, row 1 = cmin
    # out_ref: (3, S, 128)
    sublanes = u_ref.shape[1]

    @pl.loop(0, sublanes // CHUNK)
    def _(strip):
        off = pl.multiple_of(strip * CHUNK, CHUNK)
        sl = pl.ds(off, CHUNK)

        cmax = c_ref[0, sl, :]
        cmin = c_ref[1, sl, :]
        P10 = p_ref[0, sl, :]   # pressure, left
        P11 = p_ref[1, sl, :]   # pressure, right
        P20 = p_ref[2, sl, :]   # velocity, left
        P21 = p_ref[3, sl, :]   # velocity, right

        # load each side/variable exactly once, reuse below
        fL = [f_ref[2 * v + 0, sl, :] for v in range(NVARS)]
        fR = [f_ref[2 * v + 1, sl, :] for v in range(NVARS)]
        uL = [u_ref[2 * v + 0, sl, :] for v in range(NVARS)]
        uR = [u_ref[2 * v + 1, sl, :] for v in range(NVARS)]

        # ---- HLLE flux / state (shared reciprocal, hoisted cmax*cmin) ----
        # TODO(synk): HLLESolver source was not provided; the standard HLLE
        #             flux/state formulas are assumed.
        rdc = pl.reciprocal(cmax - cmin, approx=approx_recip)
        cprod = cmax * cmin
        f_h = [(cmax * fL[v] - cmin * fR[v] + cprod * (uR[v] - uL[v])) * rdc
               for v in range(NVARS)]
        u_h = [(cmax * uR[v] - cmin * uL[v] - fR[v] + fL[v]) * rdc
               for v in range(NVARS)]

        # ---- contact wave speed (quadratic root) ----
        # TODO(synk): the PyTorch module evaluates this quadratic in float64;
        #             TPU has no fast f64 path, so it is evaluated in float32
        #             and the |a| guard uses 1e-30 (1e-45 is subnormal in f32).
        a = f_h[0] + f_h[1]
        b = -(u_h[1] + u_h[0] + f_h[2])
        c = u_h[2]
        det = jnp.sqrt(jnp.maximum(b * b - 4.0 * a * c, 0.0))
        denom = jnp.where(jnp.abs(a) < 1e-30, 1e-30, a)
        # lambdaC feeds both pressC and the branch decision: keep its
        # reciprocal exact even when approx_recip=True.
        lambdaC = -0.5 * (b + det) * pl.reciprocal(denom)

        pressC = -lambdaC * a + f_h[2]          # a == f_h[0] + f_h[1]

        vL = cmin - P20
        vR = cmax - P21
        rdL = pl.reciprocal(cmin - lambdaC, approx=approx_recip)
        rdR = pl.reciprocal(cmax - lambdaC, approx=approx_recip)

        densCL = uL[0] * vL * rdL
        densCR = uR[0] * vR * rdR
        momCL = (uL[2] * vL + (pressC - P10)) * rdL
        momCR = (uR[2] * vR + (pressC - P11)) * rdR
        tauCL = ((uL[1] + uL[0]) * vL + pressC * lambdaC - P10 * P20) * rdL - densCL
        tauCR = ((uR[1] + uR[0]) * vR + pressC * lambdaC - P11 * P21) * rdR - densCR

        uCL = (densCL, tauCL, momCL)
        uCR = (densCR, tauCR, momCR)

        # Same priority as the module's sequential masking
        # (mask_R overrides mask_CR overrides mask_CL overrides mask_L):
        right_only = cmax <= 0.0
        use_cr = lambdaC <= 0.0      # given cmax > 0
        use_cl = cmin < 0.0          # given cmax > 0 and lambdaC > 0
        for v in range(NVARS):
            f_cl = fL[v] + cmin * (uCL[v] - uL[v])
            f_cr = fR[v] + cmax * (uCR[v] - uR[v])
            out_ref[v, sl, :] = jnp.where(
                right_only, fR[v],
                jnp.where(use_cr, f_cr, jnp.where(use_cl, f_cl, fL[v])))


def _plan_blocks(ncells, cells_per_block):
    """Pick (blk_sub, n_steps, total_cells) with total_cells = n_steps*blk_sub*LANE
    >= ncells.  No divisibility requirement on ncells: the tail is padded with
    benign values (at most ~n_steps*CHUNK*LANE extra cells)."""
    max_sub = max(CHUNK,
                  (max(cells_per_block, CHUNK * LANE) // LANE) // CHUNK * CHUNK)
    total_sub_min = -(-ncells // LANE)                      # ceil(ncells / 128)
    n_steps = max(1, -(-total_sub_min // max_sub))
    if n_steps == 1 and total_sub_min >= 2 * CHUNK:
        n_steps = 2                   # give both v7x TensorCores work
    if n_steps > 1 and n_steps % 2:
        n_steps += 1                  # balanced megacore split
    blk_sub = -(-total_sub_min // (n_steps * CHUNK)) * CHUNK
    return blk_sub, n_steps, n_steps * blk_sub * LANE


def hllc_solver_soa(p4, u6, f6, c2, *, cells_per_block=DEFAULT_CELLS_PER_BLOCK,
                    approx_recip=False):
    """SoA fast path (use this inside a time-stepping loop -- no relayout).
    p4: [4, ncells] = (press_L, press_R, vel_L, vel_R);
    u6, f6: [6, ncells] with row = var*2 + side; c2: [2, ncells] = (cmax, cmin).
    Returns the HLLC flux as [NVARS, ncells]."""
    assert p4.shape[0] == 4 and u6.shape[0] == 2 * NVARS and f6.shape[0] == 2 * NVARS
    assert c2.shape[0] == 2
    ncells = u6.shape[1]
    dtype = f6.dtype

    blk_sub, n_steps, total_cells = _plan_blocks(ncells, cells_per_block)
    pad = total_cells - ncells
    total_sub = total_cells // LANE

    def pad_cols(x, fill):
        if pad == 0:
            return x
        filler = jnp.broadcast_to(jnp.asarray(fill, x.dtype).reshape(-1, 1),
                                  (x.shape[0], pad))
        return jnp.concatenate([x, filler], axis=1)

    # padded cells keep cmin < 0 < cmax and zero state -> all intermediates finite
    p3 = pad_cols(p4, 0.0).reshape(4, total_sub, LANE)
    u3 = pad_cols(u6, 0.0).reshape(2 * NVARS, total_sub, LANE)
    f3 = pad_cols(f6, 0.0).reshape(2 * NVARS, total_sub, LANE)
    c3 = pad_cols(c2, jnp.array([1.0, -1.0], c2.dtype)).reshape(2, total_sub, LANE)

    def slab(rows):
        return pl.BlockSpec((rows, blk_sub, LANE), lambda i: (0, i, 0))

    out3 = pl.pallas_call(
        functools.partial(_hllc_kernel, approx_recip=approx_recip),
        out_shape=jax.ShapeDtypeStruct((NVARS, total_sub, LANE), dtype),
        grid_spec=pltpu.PrefetchScalarGridSpec(
            num_scalar_prefetch=0,
            grid=(n_steps,),
            in_specs=[slab(4), slab(2 * NVARS), slab(2 * NVARS), slab(2)],
            out_specs=slab(NVARS),
        ),
        compiler_params=pltpu.CompilerParams(
            dimension_semantics=("parallel",),
            vmem_limit_bytes=VMEM_LIMIT_BYTES,
        ),
    )(p3, u3, f3, c3)
    return out3.reshape(NVARS, total_cells)[:, :ncells]


def hllc_solver(P, U, F, cmax, cmin, *, cells_per_block=DEFAULT_CELLS_PER_BLOCK,
                approx_recip=False):
    """PyTorch-layout entry (matches HLLCSolver.forward): P/U/F [ncells, 3, 2],
    cmax/cmin [ncells] -> HLLC flux [ncells, 3].

    NOTE: the transposes below move more HBM bytes than the (HBM-bound) kernel
    itself; in a real time-stepping loop keep the state in the SoA slab layout
    and call hllc_solver_soa directly."""
    ncells, nvars, two = P.shape
    assert nvars == NVARS and two == 2

    def to_rows(x):                       # [ncells, v, 2] -> [2v, ncells]
        return jnp.transpose(x, (1, 2, 0)).reshape(-1, ncells)

    p4 = to_rows(P[:, 1:3, :])            # density primitive is never read
    c2 = jnp.stack([cmax, cmin], axis=0)
    out = hllc_solver_soa(p4, to_rows(U), to_rows(F), c2,
                          cells_per_block=cells_per_block,
                          approx_recip=approx_recip)
    return out.T


# ----------------------------- references (test only) ------------------------

def _hllc_reference_f32(P, U, F, cmax, cmin):
    """Pure-JAX float32 reference implementing arithmetic identical to the
    kernel (same op order, same 1e-30 guard, same branch priority)."""
    cM, cm = cmax[:, None], cmin[:, None]
    rdc = 1.0 / (cM - cm)
    cprod = cM * cm
    f_h = (cM * F[:, :, 0] - cm * F[:, :, 1] + cprod * (U[:, :, 1] - U[:, :, 0])) * rdc
    u_h = (cM * U[:, :, 1] - cm * U[:, :, 0] - F[:, :, 1] + F[:, :, 0]) * rdc
    a = f_h[:, 0] + f_h[:, 1]
    b = -(u_h[:, 1] + u_h[:, 0] + f_h[:, 2])
    c = u_h[:, 2]
    det = jnp.sqrt(jnp.maximum(b * b - 4.0 * a * c, 0.0))
    denom = jnp.where(jnp.abs(a) < 1e-30, 1e-30, a)
    lam = -0.5 * (b + det) * (1.0 / denom)
    pressC = -lam * a + f_h[:, 2]
    vL = cmin - P[:, 2, 0]
    vR = cmax - P[:, 2, 1]
    rdL = 1.0 / (cmin - lam)
    rdR = 1.0 / (cmax - lam)
    densCL = U[:, 0, 0] * vL * rdL
    densCR = U[:, 0, 1] * vR * rdR
    momCL = (U[:, 2, 0] * vL + (pressC - P[:, 1, 0])) * rdL
    momCR = (U[:, 2, 1] * vR + (pressC - P[:, 1, 1])) * rdR
    tauCL = ((U[:, 1, 0] + U[:, 0, 0]) * vL + pressC * lam
             - P[:, 1, 0] * P[:, 2, 0]) * rdL - densCL
    tauCR = ((U[:, 1, 1] + U[:, 0, 1]) * vR + pressC * lam
             - P[:, 1, 1] * P[:, 2, 1]) * rdR - densCR
    uCL = jnp.stack([densCL, tauCL, momCL], axis=1)
    uCR = jnp.stack([densCR, tauCR, momCR], axis=1)
    f_cl = F[:, :, 0] + cmin[:, None] * (uCL - U[:, :, 0])
    f_cr = F[:, :, 1] + cmax[:, None] * (uCR - U[:, :, 1])
    right_only = (cmax <= 0.0)[:, None]
    use_cr = (lam <= 0.0)[:, None]
    use_cl = (cmin < 0.0)[:, None]
    return jnp.where(right_only, F[:, :, 1],
                     jnp.where(use_cr, f_cr,
                               jnp.where(use_cl, f_cl, F[:, :, 0])))


def _hllc_reference_f64(P, U, F, cmax, cmin):
    """Faithful float64 NumPy transcription of HLLCSolver.forward (1e-45 guard,
    sequential mask priority).  Used only for a robust median-error check."""
    P = np.asarray(P, np.float64)
    U = np.asarray(U, np.float64)
    F = np.asarray(F, np.float64)
    cmax = np.asarray(cmax, np.float64)
    cmin = np.asarray(cmin, np.float64)
    cM, cm = cmax[:, None], cmin[:, None]
    dc = cM - cm
    f_h = (cM * F[:, :, 0] - cm * F[:, :, 1] + cM * cm * (U[:, :, 1] - U[:, :, 0])) / dc
    u_h = (cM * U[:, :, 1] - cm * U[:, :, 0] - F[:, :, 1] + F[:, :, 0]) / dc
    a = f_h[:, 0] + f_h[:, 1]
    b = -(u_h[:, 1] + u_h[:, 0] + f_h[:, 2])
    c = u_h[:, 2]
    det = np.sqrt(np.maximum(b * b - 4.0 * a * c, 0.0))
    denom = np.where(np.abs(a) < 1e-45, 1e-45, a)
    lam = -0.5 * (b + det) / denom
    pressC = -lam * (f_h[:, 1] + f_h[:, 0]) + f_h[:, 2]
    dL, dR = cmin - lam, cmax - lam
    vL, vR = cmin - P[:, 2, 0], cmax - P[:, 2, 1]
    densCL = U[:, 0, 0] * vL / dL
    densCR = U[:, 0, 1] * vR / dR
    momCL = (U[:, 2, 0] * vL + (pressC - P[:, 1, 0])) / dL
    momCR = (U[:, 2, 1] * vR + (pressC - P[:, 1, 1])) / dR
    tauCL = ((U[:, 1, 0] + U[:, 0, 0]) * vL + pressC * lam
             - P[:, 1, 0] * P[:, 2, 0]) / dL - densCL
    tauCR = ((U[:, 1, 1] + U[:, 0, 1]) * vR + pressC * lam
             - P[:, 1, 1] * P[:, 2, 1]) / dR - densCR
    uCL = np.stack([densCL, tauCL, momCL], axis=1)
    uCR = np.stack([densCR, tauCR, momCR], axis=1)
    f = np.zeros_like(f_h)
    f = np.where((cmin >= 0)[:, None], F[:, :, 0], f)
    f = np.where(((cmin < 0) & (lam > 0))[:, None],
                 F[:, :, 0] + cmin[:, None] * (uCL - U[:, :, 0]), f)
    f = np.where(((lam <= 0) & (cmax > 0))[:, None],
                 F[:, :, 1] + cmax[:, None] * (uCR - U[:, :, 1]), f)
    f = np.where((cmax <= 0)[:, None], F[:, :, 1], f)
    return f


if __name__ == "__main__":
    ncells = 12345    # deliberately NOT a multiple of 8*128: exercises padding path
    key = jax.random.PRNGKey(0)
    kr, kp, kv, ku, kf, kmx, kmn = jax.random.split(key, 7)

    # primitive vars: (density, pressure, velocity)
    rho = jax.random.uniform(kr, (ncells, 1, 2), jnp.float32, 0.5, 2.0)
    prs = jax.random.uniform(kp, (ncells, 1, 2), jnp.float32, 0.5, 2.0)
    vel = jax.random.uniform(kv, (ncells, 1, 2), jnp.float32, -0.8, 0.8)
    P = jnp.concatenate([rho, prs, vel], axis=1)                     # [ncells, 3, 2]

    U = jax.random.uniform(ku, (ncells, NVARS, 2), jnp.float32, 0.5, 2.0)
    F = jax.random.uniform(kf, (ncells, NVARS, 2), jnp.float32, -1.0, 1.0)
    cmax = jax.random.uniform(kmx, (ncells,), jnp.float32, 0.1, 1.0)    # > 0
    cmin = -jax.random.uniform(kmn, (ncells,), jnp.float32, 0.1, 1.0)   # < 0

    ref32 = np.asarray(_hllc_reference_f32(P, U, F, cmax, cmin), np.float64)
    ref64 = _hllc_reference_f64(P, U, F, cmax, cmin)

    # small block (multi-step grid) and the default large block
    for cpb in (4096, DEFAULT_CELLS_PER_BLOCK):
        out = hllc_solver(P, U, F, cmax, cmin, cells_per_block=cpb)
        out = np.asarray(jax.block_until_ready(out), np.float64)
        assert out.shape == (ncells, NVARS)
        assert np.isfinite(out).all()

        # kernel and the f32 reference implement identical arithmetic; the
        # tolerance only has to absorb ulp-level differences (and the
        # vanishingly rare branch flip at |lambdaC| ~ ulp, where the CL/CR
        # fluxes coincide anyway).
        err = np.abs(out - ref32)
        tol = 1e-3 + 1e-3 * np.abs(ref32)
        assert (err <= tol).all(), (
            f"max error vs f32 reference {err.max():.3e} (cells_per_block={cpb})")

        # robust sanity check against the faithful float64 forward
        med = float(np.median(np.abs(out - ref64)))
        assert med < 1e-4, f"median |error| vs float64 reference too large: {med}"

    print("KERNEL_OK")
</pallas_src>

<mosaic_0001>
module attributes {stable_mosaic.version = 11 : i64} {
  func.func @_hllc_kernel(%arg0: i32, %arg1: memref<4x32x128xf32, #tpu.memory_space<vmem>>, %arg2: memref<6x32x128xf32, #tpu.memory_space<vmem>>, %arg3: memref<6x32x128xf32, #tpu.memory_space<vmem>>, %arg4: memref<2x32x128xf32, #tpu.memory_space<vmem>>, %arg5: memref<3x32x128xf32, #tpu.memory_space<vmem>>) attributes {dimension_semantics = [#tpu.dimension_semantics<parallel>], iteration_bounds = array<i64: 4>, scalar_prefetch = 0 : i64, scratch_operands = 0 : i64, tpu.core_type = #tpu.core_type<tc>, window_params = [{transform_indices = @transform_0, window_bounds = array<i64: 4, 32, 128>}, {transform_indices = @transform_1, window_bounds = array<i64: 6, 32, 128>}, {transform_indices = @transform_2, window_bounds = array<i64: 6, 32, 128>}, {transform_indices = @transform_3, window_bounds = array<i64: 2, 32, 128>}, {transform_indices = @transform_4, window_bounds = array<i64: 3, 32, 128>}]} {
    %c0_i32 = arith.constant 0 : i32
    %c4_i32 = arith.constant 4 : i32
    %0 = arith.addi %c0_i32, %c4_i32 : i32
    %c1_i32 = arith.constant 1 : i32
    scf.for %arg6 = %c0_i32 to %0 step %c1_i32  : i32 {
      %c1_i32_1 = arith.constant 1 : i32
      %1 = arith.muli %arg6, %c1_i32_1 : i32
      %c0_i32_2 = arith.constant 0 : i32
      %2 = arith.addi %c0_i32_2, %1 : i32
      %c8_i32 = arith.constant 8 : i32
      %3 = arith.muli %2, %c8_i32 : i32
      %4 = tpu.assume_multiple %3, 8 : i32
      %c0 = arith.constant 0 : index
      %5 = arith.index_cast %4 : i32 to index
      %c0_3 = arith.constant 0 : index
      %6 = vector.load %arg4[%c0, %5, %c0_3] : memref<2x32x128xf32, #tpu.memory_space<vmem>>, vector<1x8x128xf32>
      %7 = vector.shape_cast %6 : vector<1x8x128xf32> to vector<8x128xf32>
      %c1 = arith.constant 1 : index
      %8 = arith.index_cast %4 : i32 to index
      %c0_4 = arith.constant 0 : index
      %9 = vector.load %arg4[%c1, %8, %c0_4] : memref<2x32x128xf32, #tpu.memory_space<vmem>>, vector<1x8x128xf32>
      %10 = vector.shape_cast %9 : vector<1x8x128xf32> to vector<8x128xf32>
      %c0_5 = arith.constant 0 : index
      %11 = arith.index_cast %4 : i32 to index
      %c0_6 = arith.constant 0 : index
      %12 = vector.load %arg1[%c0_5, %11, %c0_6] : memref<4x32x128xf32, #tpu.memory_space<vmem>>, vector<1x8x128xf32>
      %13 = vector.shape_cast %12 : vector<1x8x128xf32> to vector<8x128xf32>
      %c1_7 = arith.constant 1 : index
      %14 = arith.index_cast %4 : i32 to index
      %c0_8 = arith.constant 0 : index
      %15 = vector.load %arg1[%c1_7, %14, %c0_8] : memref<4x32x128xf32, #tpu.memory_space<vmem>>, vector<1x8x128xf32>
      %16 = vector.shape_cast %15 : vector<1x8x128xf32> to vector<8x128xf32>
      %c2 = arith.constant 2 : index
      %17 = arith.index_cast %4 : i32 to index
      %c0_9 = arith.constant 0 : index
      %18 = vector.load %arg1[%c2, %17, %c0_9] : memref<4x32x128xf32, #tpu.memory_space<vmem>>, vector<1x8x128xf32>
      %19 = vector.shape_cast %18 : vector<1x8x128xf32> to vector<8x128xf32>
      %c3 = arith.constant 3 : index
      %20 = arith.index_cast %4 : i32 to index
      %c0_10 = arith.constant 0 : index
      %21 = vector.load %arg1[%c3, %20, %c0_10] : memref<4x32x128xf32, #tpu.memory_space<vmem>>, vector<1x8x128xf32>
      %22 = vector.shape_cast %21 : vector<1x8x128xf32> to vector<8x128xf32>
      %c0_11 = arith.constant 0 : index
      %23 = arith.index_cast %4 : i32 to index
      %c0_12 = arith.constant 0 : index
      %24 = vector.load %arg3[%c0_11, %23, %c0_12] : memref<6x32x128xf32, #tpu.memory_space<vmem>>, vector<1x8x128xf32>
      %25 = vector.shape_cast %24 : vector<1x8x128xf32> to vector<8x128xf32>
      %c2_13 = arith.constant 2 : index
      %26 = arith.index_cast %4 : i32 to index
      %c0_14 = arith.constant 0 : index
      %27 = vector.load %arg3[%c2_13, %26, %c0_14] : memref<6x32x128xf32, #tpu.memory_space<vmem>>, vector<1x8x128xf32>
      %28 = vector.shape_cast %27 : vector<1x8x128xf32> to vector<8x128xf32>
      %c4 = arith.constant 4 : index
      %29 = arith.index_cast %4 : i32 to index
      %c0_15 = arith.constant 0 : index
      %30 = vector.load %arg3[%c4, %29, %c0_15] : memref<6x32x128xf32, #tpu.memory_space<vmem>>, vector<1x8x128xf32>
      %31 = vector.shape_cast %30 : vector<1x8x128xf32> to vector<8x128xf32>
      %c1_16 = arith.constant 1 : index
      %32 = arith.index_cast %4 : i32 to index
      %c0_17 = arith.constant 0 : index
      %33 = vector.load %arg3[%c1_16, %32, %c0_17] : memref<6x32x128xf32, #tpu.memory_space<vmem>>, vector<1x8x128xf32>
      %34 = vector.shape_cast %33 : vector<1x8x128xf32> to vector<8x128xf32>
      %c3_18 = arith.constant 3 : index
      %35 = arith.index_cast %4 : i32 to index
      %c0_19 = arith.constant 0 : index
      %36 = vector.load %arg3[%c3_18, %35, %c0_19] : memref<6x32x128xf32, #tpu.memory_space<vmem>>, vector<1x8x128xf32>
      %37 = vector.shape_cast %36 : vector<1x8x128xf32> to vector<8x128xf32>
      %c5 = arith.constant 5 : index
      %38 = arith.index_cast %4 : i32 to index
      %c0_20 = arith.constant 0 : index
      %39 = vector.load %arg3[%c5, %38, %c0_20] : memref<6x32x128xf32, #tpu.memory_space<vmem>>, vector<1x8x128xf32>
      %40 = vector.shape_cast %39 : vector<1x8x128xf32> to vector<8x128xf32>
      %c0_21 = arith.constant 0 : index
      %41 = arith.index_cast %4 : i32 to index
      %c0_22 = arith.constant 0 : index
      %42 = vector.load %arg2[%c0_21, %41, %c0_22] : memref<6x32x128xf32, #tpu.memory_space<vmem>>, vector<1x8x128xf32>
      %43 = vector.shape_cast %42 : vector<1x8x128xf32> to vector<8x128xf32>
      %c2_23 = arith.constant 2 : index
      %44 = arith.index_cast %4 : i32 to index
      %c0_24 = arith.constant 0 : index
      %45 = vector.load %arg2[%c2_23, %44, %c0_24] : memref<6x32x128xf32, #tpu.memory_space<vmem>>, vector<1x8x128xf32>
      %46 = vector.shape_cast %45 : vector<1x8x128xf32> to vector<8x128xf32>
      %c4_25 = arith.constant 4 : index
      %47 = arith.index_cast %4 : i32 to index
      %c0_26 = arith.constant 0 : index
      %48 = vector.load %arg2[%c4_25, %47, %c0_26] : memref<6x32x128xf32, #tpu.memory_space<vmem>>, vector<1x8x128xf32>
      %49 = vector.shape_cast %48 : vector<1x8x128xf32> to vector<8x128xf32>
      %c1_27 = arith.constant 1 : index
      %50 = arith.index_cast %4 : i32 to index
      %c0_28 = arith.constant 0 : index
      %51 = vector.load %arg2[%c1_27, %50, %c0_28] : memref<6x32x128xf32, #tpu.memory_space<vmem>>, vector<1x8x128xf32>
      %52 = vector.shape_cast %51 : vector<1x8x128xf32> to vector<8x128xf32>
      %c3_29 = arith.constant 3 : index
      %53 = arith.index_cast %4 : i32 to index
      %c0_30 = arith.constant 0 : index
      %54 = vector.load %arg2[%c3_29, %53, %c0_30] : memref<6x32x128xf32, #tpu.memory_space<vmem>>, vector<1x8x128xf32>
      %55 = vector.shape_cast %54 : vector<1x8x128xf32> to vector<8x128xf32>
      %c5_31 = arith.constant 5 : index
      %56 = arith.index_cast %4 : i32 to index
      %c0_32 = arith.constant 0 : index
      %57 = vector.load %arg2[%c5_31, %56, %c0_32] : memref<6x32x128xf32, #tpu.memory_space<vmem>>, vector<1x8x128xf32>
      %58 = vector.shape_cast %57 : vector<1x8x128xf32> to vector<8x128xf32>
      %59 = arith.subf %7, %10 : vector<8x128xf32>
      %60 = tpu.reciprocal %59 : vector<8x128xf32> -> vector<8x128xf32>
      %61 = arith.mulf %7, %10 : vector<8x128xf32>
      %62 = arith.mulf %7, %25 : vector<8x128xf32>
      %63 = arith.mulf %10, %34 : vector<8x128xf32>
      %64 = arith.subf %62, %63 : vector<8x128xf32>
      %65 = arith.subf %52, %43 : vector<8x128xf32>
      %66 = arith.mulf %61, %65 : vector<8x128xf32>
      %67 = arith.addf %64, %66 : vector<8x128xf32>
      %68 = arith.mulf %67, %60 : vector<8x128xf32>
      %69 = arith.mulf %7, %28 : vector<8x128xf32>
      %70 = arith.mulf %10, %37 : vector<8x128xf32>
      %71 = arith.subf %69, %70 : vector<8x128xf32>
      %72 = arith.subf %55, %46 : vector<8x128xf32>
      %73 = arith.mulf %61, %72 : vector<8x128xf32>
      %74 = arith.addf %71, %73 : vector<8x128xf32>
      %75 = arith.mulf %74, %60 : vector<8x128xf32>
      %76 = arith.mulf %7, %31 : vector<8x128xf32>
      %77 = arith.mulf %10, %40 : vector<8x128xf32>
      %78 = arith.subf %76, %77 : vector<8x128xf32>
      %79 = arith.subf %58, %49 : vector<8x128xf32>
      %80 = arith.mulf %61, %79 : vector<8x128xf32>
      %81 = arith.addf %78, %80 : vector<8x128xf32>
      %82 = arith.mulf %81, %60 : vector<8x128xf32>
      %83 = arith.mulf %7, %52 : vector<8x128xf32>
      %84 = arith.mulf %10, %43 : vector<8x128xf32>
      %85 = arith.subf %83, %84 : vector<8x128xf32>
      %86 = arith.subf %85, %34 : vector<8x128xf32>
      %87 = arith.addf %86, %25 : vector<8x128xf32>
      %88 = arith.mulf %87, %60 : vector<8x128xf32>
      %89 = arith.mulf %7, %55 : vector<8x128xf32>
      %90 = arith.mulf %10, %46 : vector<8x128xf32>
      %91 = arith.subf %89, %90 : vector<8x128xf32>
      %92 = arith.subf %91, %37 : vector<8x128xf32>
      %93 = arith.addf %92, %28 : vector<8x128xf32>
      %94 = arith.mulf %93, %60 : vector<8x128xf32>
      %95 = arith.mulf %7, %58 : vector<8x128xf32>
      %96 = arith.mulf %10, %49 : vector<8x128xf32>
      %97 = arith.subf %95, %96 : vector<8x128xf32>
      %98 = arith.subf %97, %40 : vector<8x128xf32>
      %99 = arith.addf %98, %31 : vector<8x128xf32>
      %100 = arith.mulf %99, %60 : vector<8x128xf32>
      %101 = arith.addf %68, %75 : vector<8x128xf32>
      %102 = arith.addf %94, %88 : vector<8x128xf32>
      %103 = arith.addf %102, %82 : vector<8x128xf32>
      %cst = arith.constant 0.000000e+00 : f32
      %104 = vector.broadcast %cst : f32 to vector<8x128xf32>
      %105 = arith.subf %104, %103 : vector<8x128xf32>
      %106 = arith.mulf %105, %105 : vector<8x128xf32>
      %cst_33 = arith.constant 4.000000e+00 : f32
      %107 = vector.broadcast %cst_33 : f32 to vector<8x128xf32>
      %108 = arith.mulf %107, %101 : vector<8x128xf32>
      %109 = arith.mulf %108, %100 : vector<8x128xf32>
      %110 = arith.subf %106, %109 : vector<8x128xf32>
      %cst_34 = arith.constant 0.000000e+00 : f32
      %111 = vector.broadcast %cst_34 : f32 to vector<8x128xf32>
      %112 = arith.maximumf %110, %111 : vector<8x128xf32>
      %113 = math.sqrt %112 : vector<8x128xf32>
      %114 = math.absf %101 : vector<8x128xf32>
      %cst_35 = arith.constant 1.000000e-30 : f32
      %115 = vector.broadcast %cst_35 : f32 to vector<8x128xf32>
      %116 = arith.cmpf olt, %114, %115 : vector<8x128xf32>
      %cst_36 = arith.constant 1.000000e-30 : f32
      %117 = vector.broadcast %cst_36 : f32 to vector<8x128xf32>
      %118 = arith.select %116, %117, %101 : vector<8x128xi1>, vector<8x128xf32>
      %119 = arith.addf %105, %113 : vector<8x128xf32>
      %cst_37 = arith.constant -5.000000e-01 : f32
      %120 = vector.broadcast %cst_37 : f32 to vector<8x128xf32>
      %121 = arith.mulf %120, %119 : vector<8x128xf32>
      %122 = tpu.reciprocal %118 : vector<8x128xf32> -> vector<8x128xf32>
      %123 = arith.mulf %121, %122 : vector<8x128xf32>
      %cst_38 = arith.constant 0.000000e+00 : f32
      %124 = vector.broadcast %cst_38 : f32 to vector<8x128xf32>
      %125 = arith.subf %124, %123 : vector<8x128xf32>
      %126 = arith.mulf %125, %101 : vector<8x128xf32>
      %127 = arith.addf %126, %82 : vector<8x128xf32>
      %128 = arith.subf %10, %19 : vector<8x128xf32>
      %129 = arith.subf %7, %22 : vector<8x128xf32>
      %130 = arith.subf %10, %123 : vector<8x128xf32>
      %131 = tpu.reciprocal %130 : vector<8x128xf32> -> vector<8x128xf32>
      %132 = arith.subf %7, %123 : vector<8x128xf32>
      %133 = tpu.reciprocal %132 : vector<8x128xf32> -> vector<8x128xf32>
      %134 = arith.mulf %43, %128 : vector<8x128xf32>
      %135 = arith.mulf %134, %131 : vector<8x128xf32>
      %136 = arith.mulf %52, %129 : vector<8x128xf32>
      %137 = arith.mulf %136, %133 : vector<8x128xf32>
      %138 = arith.mulf %49, %128 : vector<8x128xf32>
      %139 = arith.subf %127, %13 : vector<8x128xf32>
      %140 = arith.addf %138, %139 : vector<8x128xf32>
      %141 = arith.mulf %140, %131 : vector<8x128xf32>
      %142 = arith.mulf %58, %129 : vector<8x128xf32>
      %143 = arith.subf %127, %16 : vector<8x128xf32>
      %144 = arith.addf %142, %143 : vector<8x128xf32>
      %145 = arith.mulf %144, %133 : vector<8x128xf32>
      %146 = arith.addf %46, %43 : vector<8x128xf32>
      %147 = arith.mulf %146, %128 : vector<8x128xf32>
      %148 = arith.mulf %127, %123 : vector<8x128xf32>
      %149 = arith.addf %147, %148 : vector<8x128xf32>
      %150 = arith.mulf %13, %19 : vector<8x128xf32>
      %151 = arith.subf %149, %150 : vector<8x128xf32>
      %152 = arith.mulf %151, %131 : vector<8x128xf32>
      %153 = arith.subf %152, %135 : vector<8x128xf32>
      %154 = arith.addf %55, %52 : vector<8x128xf32>
      %155 = arith.mulf %154, %129 : vector<8x128xf32>
      %156 = arith.mulf %127, %123 : vector<8x128xf32>
      %157 = arith.addf %155, %156 : vector<8x128xf32>
      %158 = arith.mulf %16, %22 : vector<8x128xf32>
      %159 = arith.subf %157, %158 : vector<8x128xf32>
      %160 = arith.mulf %159, %133 : vector<8x128xf32>
      %161 = arith.subf %160, %137 : vector<8x128xf32>
      %cst_39 = arith.constant 0.000000e+00 : f32
      %162 = vector.broadcast %cst_39 : f32 to vector<8x128xf32>
      %163 = arith.cmpf ole, %7, %162 : vector<8x128xf32>
      %cst_40 = arith.constant 0.000000e+00 : f32
      %164 = vector.broadcast %cst_40 : f32 to vector<8x128xf32>
      %165 = arith.cmpf ole, %123, %164 : vector<8x128xf32>
      %cst_41 = arith.constant 0.000000e+00 : f32
      %166 = vector.broadcast %cst_41 : f32 to vector<8x128xf32>
      %167 = arith.cmpf olt, %10, %166 : vector<8x128xf32>
      %168 = arith.subf %135, %43 : vector<8x128xf32>
      %169 = arith.mulf %10, %168 : vector<8x128xf32>
      %170 = arith.addf %25, %169 : vector<8x128xf32>
      %171 = arith.subf %137, %52 : vector<8x128xf32>
      %172 = arith.mulf %7, %171 : vector<8x128xf32>
      %173 = arith.addf %34, %172 : vector<8x128xf32>
      %174 = arith.select %167, %170, %25 : vector<8x128xi1>, vector<8x128xf32>
      %175 = arith.select %165, %173, %174 : vector<8x128xi1>, vector<8x128xf32>
      %176 = arith.select %163, %34, %175 : vector<8x128xi1>, vector<8x128xf32>
      %c0_42 = arith.constant 0 : index
      %177 = arith.index_cast %4 : i32 to index
      %c0_43 = arith.constant 0 : index
      %178 = vector.load %arg5[%c0_42, %177, %c0_43] : memref<3x32x128xf32, #tpu.memory_space<vmem>>, vector<1x8x128xf32>
      %179 = vector.shape_cast %178 : vector<1x8x128xf32> to vector<8x128xf32>
      %180 = vector.shape_cast %176 : vector<8x128xf32> to vector<1x8x128xf32>
      tpu.vector_store %arg5[%c0_42, %177, %c0_43], %180 {strides = array<i32>} : memref<3x32x128xf32, #tpu.memory_space<vmem>>, vector<1x8x128xf32>,
      %181 = arith.subf %153, %46 : vector<8x128xf32>
      %182 = arith.mulf %10, %181 : vector<8x128xf32>
      %183 = arith.addf %28, %182 : vector<8x128xf32>
      %184 = arith.subf %161, %55 : vector<8x128xf32>
      %185 = arith.mulf %7, %184 : vector<8x128xf32>
      %186 = arith.addf %37, %185 : vector<8x128xf32>
      %187 = arith.select %167, %183, %28 : vector<8x128xi1>, vector<8x128xf32>
      %188 = arith.select %165, %186, %187 : vector<8x128xi1>, vector<8x128xf32>
      %189 = arith.select %163, %37, %188 : vector<8x128xi1>, vector<8x128xf32>
      %c1_44 = arith.constant 1 : index
      %190 = arith.index_cast %4 : i32 to index
      %c0_45 = arith.constant 0 : index
      %191 = vector.load %arg5[%c1_44, %190, %c0_45] : memref<3x32x128xf32, #tpu.memory_space<vmem>>, vector<1x8x128xf32>
      %192 = vector.shape_cast %191 : vector<1x8x128xf32> to vector<8x128xf32>
      %193 = vector.shape_cast %189 : vector<8x128xf32> to vector<1x8x128xf32>
      tpu.vector_store %arg5[%c1_44, %190, %c0_45], %193 {strides = array<i32>} : memref<3x32x128xf32, #tpu.memory_space<vmem>>, vector<1x8x128xf32>,
      %194 = arith.subf %141, %49 : vector<8x128xf32>
      %195 = arith.mulf %10, %194 : vector<8x128xf32>
      %196 = arith.addf %31, %195 : vector<8x128xf32>
      %197 = arith.subf %145, %58 : vector<8x128xf32>
      %198 = arith.mulf %7, %197 : vector<8x128xf32>
      %199 = arith.addf %40, %198 : vector<8x128xf32>
      %200 = arith.select %167, %196, %31 : vector<8x128xi1>, vector<8x128xf32>
      %201 = arith.select %165, %199, %200 : vector<8x128xi1>, vector<8x128xf32>
      %202 = arith.select %163, %40, %201 : vector<8x128xi1>, vector<8x128xf32>
      %c2_46 = arith.constant 2 : index
      %203 = arith.index_cast %4 : i32 to index
      %c0_47 = arith.constant 0 : index
      %204 = vector.load %arg5[%c2_46, %203, %c0_47] : memref<3x32x128xf32, #tpu.memory_space<vmem>>, vector<1x8x128xf32>
      %205 = vector.shape_cast %204 : vector<1x8x128xf32> to vector<8x128xf32>
      %206 = vector.shape_cast %202 : vector<8x128xf32> to vector<1x8x128xf32>
      tpu.vector_store %arg5[%c2_46, %203, %c0_47], %206 {strides = array<i32>} : memref<3x32x128xf32, #tpu.memory_space<vmem>>, vector<1x8x128xf32>,
    }
    %c4_i32_0 = arith.constant 4 : i32
    return
  }
  func.func @transform_0(%arg0: i32) -> (i32, i32, i32) {
    %c0_i32 = arith.constant 0 : i32
    %c0_i32_0 = arith.constant 0 : i32
    %c0_i32_1 = arith.constant 0 : i32
    return %c0_i32, %arg0, %c0_i32_0 : i32, i32, i32
  }
  func.func @transform_1(%arg0: i32) -> (i32, i32, i32) {
    %c0_i32 = arith.constant 0 : i32
    %c0_i32_0 = arith.constant 0 : i32
    %c0_i32_1 = arith.constant 0 : i32
    return %c0_i32, %arg0, %c0_i32_0 : i32, i32, i32
  }
  func.func @transform_2(%arg0: i32) -> (i32, i32, i32) {
    %c0_i32 = arith.constant 0 : i32
    %c0_i32_0 = arith.constant 0 : i32
    %c0_i32_1 = arith.constant 0 : i32
    return %c0_i32, %arg0, %c0_i32_0 : i32, i32, i32
  }
  func.func @transform_3(%arg0: i32) -> (i32, i32, i32) {
    %c0_i32 = arith.constant 0 : i32
    %c0_i32_0 = arith.constant 0 : i32
    %c0_i32_1 = arith.constant 0 : i32
    return %c0_i32, %arg0, %c0_i32_0 : i32, i32, i32
  }
  func.func @transform_4(%arg0: i32) -> (i32, i32, i32) {
    %c0_i32 = arith.constant 0 : i32
    %c0_i32_0 = arith.constant 0 : i32
    %c0_i32_1 = arith.constant 0 : i32
    return %c0_i32, %arg0, %c0_i32_0 : i32, i32, i32
  }
}

</mosaic_0001>

<bundles_post_ra>
// kernel: tpu_custom_call.1
= control target key start
LH: loop header
LB: loop body
LE: loop exit
PB: predicated region body
PF: predicated region fallthrough
CT: control target
= control target key end

     0   :  { %s1546_s0 = inlined_call_operand.hbm [shape: f32[4,128,128], index: 0, kind: input, shape index: {}]   ;;  %s1547_s1 = inlined_call_operand.hbm [shape: f32[6,128,128], index: 1, kind: input, shape index: {}]   ;;  %s1548_s2 = inlined_call_operand.hbm [shape: f32[6,128,128], index: 2, kind: input, shape index: {}]   ;;  %s1549_s3 = inlined_call_operand.hbm [shape: f32[2,128,128], index: 3, kind: input, shape index: {}]   ;;  %s1550_s4 = inlined_call_operand.hbm [shape: f32[3,128,128], index: 4, kind: output, shape index: {}]  }
   0x1   :  { %1551 = sst [smem:[#allocation29_spill]] %s1546_s0 }
   0x2   :  { %9 = vsyncpa [#allocation3], 0 }
   0x3   :  { %11 = vsyncpa [#allocation3 + $0x1], 0 }
   0x4   :  { %12 = vsyncpa [#allocation6], 0 }
   0x5   :  { %14 = vsyncpa [#allocation6 + $0x1], 0 }
   0x6   :  { %15 = vsyncpa [#allocation9], 0 }
   0x7   :  { %17 = vsyncpa [#allocation9 + $0x1], 0 }
   0x8   :  { %18 = vsyncpa [#allocation4], 0 }
   0x9   :  { %20 = vsyncpa [#allocation4 + $0x1], 0  ;;  %s1174_s15 = smov 0   ;;  %s1176_s16 = smov 0  }
   0xa   :  { %s1178_s17 = smov 0   ;;  %s1180_s18 = smov 0  }
   0xb LB: > { %s1195_s19 = sadd.s32 4294967295, %s1112_s18   ;;  %s862_s20 = sadd.s32 4294967294, %s1112_s18   ;;  %s1112_s18 = sphi %s1180_s18, %s1560_s18   ;;  %s1108_s17 = sphi %s1178_s17, %s1559_s17   ;;  %s1104_s16 = sphi %s1176_s16, %s1558_s16   ;;  %s1100_s15 = sphi %s1174_s15, %s1557_s15  }
   0xc   : > { %s1199_s21 = sadd.s32 1, %s1112_s18   ;;  %s33_s22 = sadd.s32 1, %s1108_s17 }
   0xd   : > { %s30_s23 = ssub.s32 %s1112_s18, %s1199_s21  ;;  %p40_p0 = scmp.ne.s32.totalorder %s1108_s17, %s1104_s16 }
   0xe   : > { %p31_p1 = scmp.eq.s32.totalorder %s30_s23, 0  ;;  %p41_p2 = scmp.eq.s32.totalorder %s1112_s18, 0 }
   0xf   : > { %p46_p3 = scmp.ne.s32.totalorder %s1104_s16, %s1100_s15  ;;  %p47_p4 = scmp.eq.s32.totalorder %s1195_s19, 0 }
  0x10   : > { %s1211_s24 = scalar_select %p31_p1, %s1108_s17, %s33_s22  }
  0x11   : > { %p1213_p5 = por %p41_p2, %p40_p0  ;;  %p1217_p6 = por %p47_p4, %p46_p3 }
  0x12   : > { %p148_p7 = scmp.eq.s32.totalorder %s1195_s19, 3  ;;  %p154_p8 = scmp.eq.s32.totalorder %s862_s20, 3 }
  0x13   : > { %p864_p11 = scmp.ge.s32.totalorder %s1112_s18, 4 }
  0x14   : > { %p1222_p9 = por %p148_p7, %p40_p0  ;;  %p1226_p10 = por %p154_p8, %p46_p3 }
  0x15   : > { %170 = sbr.rel (%p864_p11) target bundleno = 77 (0x4d), region = 16 }
  0x1a   : > { %s1232_s29 = sand.u32 1, %s1108_s17   ;;  %s1235_s30 = sshll.u32 %s1112_s18, 9 }
  0x1b   : > { %s865_s5 = sshll.u32 %s1232_s29, 7  ;;  %s1556_s0 = sld [smem:[#allocation29_spill]] }
  0x1c   : > { %s932_s9 = scalar_select %p1213_p5, [#allocation0], [#allocation21] }
  0x1d   : > { %s178_s10 = scalar_lea.vmem [#allocation2], %s865_s5  ;;  %s1118_s13 = smov 2048  }
  0x1e   : > { %s197_s11 = sshll.u32 %s178_s10, 4  ;;  %s189_s12 = sld [smem:[%s932_s9]]   ;;  %s198_s11 = int_to_ptr.vmem [resolvable:$true] %s197_s11 }
  0x1f   : > { %933 = sst [smem:[#allocation12]] (%p1213_p5), %s1118_s13  ;;  %s1119_s14 = smov 512  }
  0x20   : > { %934 = sst [smem:[#allocation12 + $0x1]] (%p1213_p5), %s1119_s14  ;;  %s1120_s20 = smov 4  }
  0x21   : > { %s184_s8 = scalar_lea.hbm %s1556_s0, %s1235_s30  ;;  %935 = sst [smem:[#allocation12 + $0x2]] (%p1213_p5), %s1120_s20 }
  0x22   : > { %s1121_s22 = smov 128   ;;  %s1122_s5 = smov 8  }
  0x23   : > { %936 = sst [smem:[#allocation12 + $0x3]] (%p1213_p5), %s1121_s22  ;;  %s175_s7 = scalar_lea.sflag [#allocation3], %s1232_s29 }
  0x24   : > { %937 = sst [smem:[#allocation12 + $0x4]] (%p1213_p5), %s1121_s22  ;;  %s868_s23 = sshll.u32 %s189_s12, 26 }
  0x25   : > { %938 = sst [smem:[#allocation12 + $0x5]] (%p1213_p5), %s1122_s5  ;;  %s869_s6 = sadd.s32 134217728, %s868_s23 }
  0x26   : > { %s1123_s9 = smov 131072  }
  0x27   : > { %939 = dma.general (%p1213_p5), %s184_s8, 2048, %s198_s11, %s175_s7, %s1123_s9, [#allocation12], %s869_s6, 0  }
  0x28   : > { %s220_s10 = sand.u32 1, %s1112_s18   ;;  %s928_s13 = smul.u32 192, %s1232_s29 }
  0x29   : > { %s940_s12 = scalar_select %p1213_p5, [#allocation0], [#allocation22] }
  0x2a   : > { %s230_s22 = scalar_lea.hbm %s1547_s1, %s1235_s30  ;;  %s1124_s23 = smov 2048  }
  0x2b   : > { %941 = sst [smem:[#allocation14]] (%p1213_p5), %s1124_s23  ;;  %s224_s11 = scalar_lea.vmem [#allocation5], %s928_s13 }
  0x2c   : > { %s235_s8 = sld [smem:[%s940_s12]]   ;;  %s243_s5 = sshll.u32 %s224_s11, 4  ;;  %s244_s5 = int_to_ptr.vmem [resolvable:$true] %s243_s5 }
  0x2d   : > { %s1125_s6 = smov 512   ;;  %s1126_s7 = smov 4  }
  0x2e   : > { %942 = sst [smem:[#allocation14 + $0x1]] (%p1213_p5), %s1125_s6  ;;  %s1127_s9 = smov 128  }
  0x2f   : > { %943 = sst [smem:[#allocation14 + $0x2]] (%p1213_p5), %s1126_s7  ;;  %s1128_s20 = smov 8  }
  0x30   : > { %944 = sst [smem:[#allocation14 + $0x3]] (%p1213_p5), %s1127_s9  ;;  %s221_s23 = scalar_lea.sflag [#allocation6], %s220_s10 }
  0x31   : > { %945 = sst [smem:[#allocation14 + $0x4]] (%p1213_p5), %s1127_s9  ;;  %s1129_s0 = smov 131072  }
  0x32   : > { %s872_s14 = sshll.u32 %s235_s8, 26  ;;  %946 = sst [smem:[#allocation14 + $0x5]] (%p1213_p5), %s1128_s20 }
  0x33   : > { %s873_s12 = sadd.s32 134217728, %s872_s14 }
  0x34   : > { %947 = dma.general (%p1213_p5), %s230_s22, 3072, %s244_s5, %s221_s23, %s1129_s0, [#allocation14], %s873_s12, 0  }
  0x35   : > { %s276_s7 = scalar_lea.hbm %s1548_s2, %s1235_s30  ;;  %s270_s9 = scalar_lea.vmem [#allocation7], %s928_s13 }
  0x36   : > { %s948_s8 = scalar_select %p1213_p5, [#allocation0], [#allocation23] }
  0x37   : > { %s289_s14 = sshll.u32 %s270_s9, 4  ;;  %s1130_s0 = smov 2048   ;;  %s290_s14 = int_to_ptr.vmem [resolvable:$true] %s289_s14 }
  0x38   : > { %s281_s10 = sld [smem:[%s948_s8]]   ;;  %s1131_s22 = smov 512  }
  0x39   : > { %949 = sst [smem:[#allocation16]] (%p1213_p5), %s1130_s0  ;;  %s1132_s5 = smov 4  }
  0x3a   : > { %950 = sst [smem:[#allocation16 + $0x1]] (%p1213_p5), %s1131_s22  ;;  %s1133_s20 = smov 128  }
  0x3b   : > { %951 = sst [smem:[#allocation16 + $0x2]] (%p1213_p5), %s1132_s5  ;;  %s1134_s13 = smov 8  }
  0x3c   : > { %952 = sst [smem:[#allocation16 + $0x3]] (%p1213_p5), %s1133_s20  ;;  %s1135_s6 = smov 131072  }
  0x3d   : > { %953 = sst [smem:[#allocation16 + $0x4]] (%p1213_p5), %s1133_s20 }
  0x3e   : > { %s876_s12 = sshll.u32 %s281_s10, 26  ;;  %954 = sst [smem:[#allocation16 + $0x5]] (%p1213_p5), %s1134_s13 }
  0x3f   : > { %s877_s11 = sadd.s32 134217728, %s876_s12 }
  0x40   : > { %955 = dma.general (%p1213_p5), %s276_s7, 3072, %s290_s14, %s221_s23, %s1135_s6, [#allocation16], %s877_s11, 0  }
  0x41   : > { %s878_s8 = sshll.u32 %s1232_s29, 6  ;;  %s322_s10 = scalar_lea.hbm %s1549_s3, %s1235_s30 }
  0x42   : > { %s956_s22 = scalar_select %p1213_p5, [#allocation0], [#allocation24] }
  0x43   : > { %s316_s5 = scalar_lea.vmem [#allocation8], %s878_s8  ;;  %s1136_s7 = smov 2048  }
  0x44   : > { %s335_s20 = sshll.u32 %s316_s5, 4  ;;  %s327_s23 = sld [smem:[%s956_s22]]   ;;  %s336_s20 = int_to_ptr.vmem [resolvable:$true] %s335_s20 }
  0x45   : > { %957 = sst [smem:[#allocation18]] (%p1213_p5), %s1136_s7  ;;  %s1137_s14 = smov 512  }
  0x46   : > { %958 = sst [smem:[#allocation18 + $0x1]] (%p1213_p5), %s1137_s14  ;;  %s1138_s12 = smov 4  }
  0x47   : > { %959 = sst [smem:[#allocation18 + $0x2]] (%p1213_p5), %s1138_s12  ;;  %s1139_s13 = smov 128  }
  0x48   : > { %960 = sst [smem:[#allocation18 + $0x3]] (%p1213_p5), %s1139_s13  ;;  %s1140_s11 = smov 8  }
  0x49   : > { %961 = sst [smem:[#allocation18 + $0x4]] (%p1213_p5), %s1139_s13  ;;  %s313_s8 = scalar_lea.sflag [#allocation9], %s1232_s29 }
  0x4a   : > { %s881_s30 = sshll.u32 %s327_s23, 26  ;;  %962 = sst [smem:[#allocation18 + $0x5]] (%p1213_p5), %s1140_s11 }
  0x4b   : > { %s882_s6 = sadd.s32 134217728, %s881_s30  ;;  %s1141_s9 = smov 131072  }
  0x4c   : > { %963 = dma.general (%p1213_p5), %s322_s10, 1024, %s336_s20, %s313_s8, %s1141_s9, [#allocation18], %s882_s6, 0  }
  0x4d PF: > { %p883_p12 = scmp.ge.s32.totalorder %s1112_s18, 1  ;;  %p356_p13 = scmp.lt.s32.totalorder %s1112_s18, 5 }
  0x4f   : > { %p357_p0 = pnand %p883_p12, %p356_p13 }
  0x50   : > { %s1326_s0 = sand.u32 (!%p357_p0), 1, %s1104_s16  }
  0x51   : > { %360 = sbr.rel (%p357_p0) target bundleno = 197 (0xc5), region = 36  ;;  %s884_s22 = sshll.u32 (!%p357_p0), %s1326_s0, 7 }
  0x52   : > { %s363_s5 = scalar_lea.sflag (!%p357_p0), [#allocation3], %s1326_s0  ;;  %s1330_s23 = scalar_lea.vmem (!%p357_p0), [#allocation2], %s884_s22 }
  0x56   : > { %1083 = dma.done.wait (%p1217_p6), %s363_s5, 2048  }
  0x57   : > { %1085 = vsyncadd (%p1217_p6), %s363_s5, 4294965248  ;;  %s371_s25 = sand.u32 1, %s1195_s19   ;;  %s930_s29 = smul.u32 192, %s1326_s0 }
  0x58   : > { %s372_s10 = scalar_lea.sflag [#allocation6], %s371_s25 }
  0x59   : > { %s1338_s20 = scalar_lea.vmem [#allocation5], %s930_s29 }
  0x5a   : > { %1087 = dma.done.wait (%p1217_p6), %s372_s10, 6144  }
  0x5b   : > { %1089 = vsyncadd (%p1217_p6), %s372_s10, 4294961152  ;;  %s885_s7 = sshll.u32 %s1326_s0, 6  ;;  %s1345_s14 = scalar_lea.vmem [#allocation7], %s930_s29 }
  0x5c   : > { %s390_s12 = scalar_lea.sflag [#allocation9], %s1326_s0  ;;  %s1348_s13 = scalar_lea.vmem [#allocation8], %s885_s7 }
  0x5d   : > { %1091 = dma.done.wait (%p1217_p6), %s390_s12, 1024  }
  0x5e   : > { %1093 = vsyncadd (%p1217_p6), %s390_s12, 4294966272  ;;  %s931_s30 = smul.u32 96, %s1326_s0  ;;  %s1357_s6 = smov 0  }
  0x60   : > { %s1355_s11 = scalar_lea.vmem [#allocation10], %s931_s30 }
  0x61 LB: >> { %s1363_s8 = sshll.u32 %s1116_s6, 3  ;;  %s443_s6 = sadd.s32 1, %s1116_s6   ;;  %s1116_s6 = sphi %s1357_s6, %s443_s6  }
  0x62   : >> { %s445_s26 = scalar_lea.vmem %s1348_s13, %s1363_s8 [#allocation8]  ;;  %s460_s9 = scalar_lea.vmem %s1345_s14, %s1363_s8 [#allocation7] }
  0x63   : >> { %v1367_v0 = vld [vmem:[%s445_s26] sm:$0xff]  ;;  %s474_s22 = scalar_lea.vmem %s1338_s20, %s1363_s8 [#allocation5]  ;;  %s450_s5 = scalar_lea.vmem %s1330_s23, %s1363_s8 [#allocation2] }
  0x64   : >> { %v1369_v1 = vld [vmem:[%s445_s26 + $0x20] sm:$0xff]  ;;  %vm587_vm5 = vcmp.le.f32.partialorder %v1367_v0, 0.0  ;;  %s599_s25 = scalar_lea.vmem %s1355_s11, %s1363_s8 [#allocation10]  ;;  %p440_p1 = scmp.ge.s32.totalorder %s443_s6, 4  }
  0x65   : >> { %v486_v2 = vsub.f32 %v1367_v0, %v1369_v1  ;;  %v1377_v3 = vld [vmem:[%s460_s9] sm:$0xff]  ;;  %v488_v19 = vmul.f32 %v1369_v1, %v1367_v0  ;;  %vm589_vm3 = vcmp.lt.f32.partialorder %v1369_v1, 0.0  ;;  %s624_s29 = scalar_lea.sflag (%p440_p1), [#allocation4], %s1326_s0 }
  0x66   : >> { %v1379_v4 = vld [vmem:[%s460_s9 + $0x40] sm:$0xff]  ;;  %v489_v12 = vmul.f32 %v1377_v3, %v1367_v0 }
  0x67   : >> { %v1381_v5 = vld [vmem:[%s460_s9 + $0x80] sm:$0xff]  ;;  %1052 = vrcp.f32 %v486_v2  ;;  %v496_v14 = vmul.f32 %v1379_v4, %v1367_v0 }
  0x68   : >> { %v1383_v6 = vld [vmem:[%s460_s9 + $0x20] sm:$0xff]  ;;  %v503_v20 = vmul.f32 %v1381_v5, %v1367_v0 }
  0x69   : >> { %v1385_v7 = vld [vmem:[%s460_s9 + $0x60] sm:$0xff]  ;;  %v490_v13 = vmul.f32 %v1383_v6, %v1369_v1 }
  0x6a   : >> { %v1387_v8 = vld [vmem:[%s460_s9 + $0xa0] sm:$0xff]  ;;  %v497_v15 = vmul.f32 %v1385_v7, %v1369_v1 }
  0x6b   : >> { %v1389_v9 = vld [vmem:[%s474_s22] sm:$0xff]  ;;  %v504_v25 = vmul.f32 %v1387_v8, %v1369_v1  ;;  %v491_v30 = vsub.f32 %v489_v12, %v490_v13 }
  0x6c   : >> { %v1391_v10 = vld [vmem:[%s474_s22 + $0x40] sm:$0xff]  ;;  %v511_v21 = vmul.f32 %v1369_v1, %v1389_v9  ;;  %v498_v31 = vsub.f32 %v496_v14, %v497_v15 }
  0x6d   : >> { %v1393_v11 = vld [vmem:[%s474_s22 + $0x80] sm:$0xff]  ;;  %v517_v22 = vmul.f32 %v1391_v10, %v1369_v1  ;;  %v505_v37 = vsub.f32 %v503_v20, %v504_v25 }
  0x6e   : >> { %v1403_v16 = vld [vmem:[%s474_s22 + $0x20] sm:$0xff]  ;;  %v523_v26 = vmul.f32 %v1393_v11, %v1369_v1 }
  0x6f   : >> { %v1405_v17 = vld [vmem:[%s474_s22 + $0x60] sm:$0xff]  ;;  %v492_v23 = vsub.f32 %v1403_v16, %v1389_v9  ;;  %v510_v28 = vmul.f32 %v1403_v16, %v1367_v0 }
  0x70   : >> { %v1407_v18 = vld [vmem:[%s474_s22 + $0xa0] sm:$0xff]  ;;  %v499_v24 = vsub.f32 %v1405_v17, %v1391_v10  ;;  %v516_v29 = vmul.f32 %v1405_v17, %v1367_v0 }
  0x71   : >> { %v506_v27 = vsub.f32 %v1407_v18, %v1393_v11  ;;  %v522_v32 = vmul.f32 %v1407_v18, %v1367_v0  ;;  %v493_v33 = vmul.f32 %v492_v23, %v488_v19  ;;  %v512_v35 = vsub.f32 %v510_v28, %v511_v21 }
  0x72   : >> { %v500_v34 = vmul.f32 %v499_v24, %v488_v19  ;;  %v518_v36 = vsub.f32 %v516_v29, %v517_v22  ;;  %v892_v24 = vld [vmem:[%s450_s5 + $0x40] sm:$0xff] }
  0x73   : >> { %v507_v38 = vmul.f32 %v506_v27, %v488_v19  ;;  %v524_v39 = vsub.f32 %v522_v32, %v523_v26  ;;  %v513_v40 = vsub.f32 %v512_v35, %v1383_v6  ;;  %v494_v43 = vadd.f32 %v493_v33, %v491_v30  ;;  %v894_v26 = vld [vmem:[%s450_s5 + $0x60] sm:$0xff] }
  0x74   : >> { %v519_v41 = vsub.f32 %v518_v36, %v1385_v7  ;;  %v501_v44 = vadd.f32 %v500_v34, %v498_v31  ;;  %v1053_v48 = vpop.eup %1052  ;;  %v554_v28 = vsub.f32 %v1369_v1, %v892_v24  ;;  %v572_v32 = vadd.f32 %v1391_v10, %v1389_v9 }
  0x75   : >> { %v525_v42 = vsub.f32 %v524_v39, %v1387_v8  ;;  %v514_v45 = vadd.f32 %v513_v40, %v1377_v3  ;;  %v508_v46 = vadd.f32 %v507_v38, %v505_v37  ;;  %v495_v50 = vmul.f32 %v1053_v48, %v494_v43  ;;  %v451_v38 = vld [vmem:[%s450_s5] sm:$0xff] }
  0x76   : >> { %v520_v47 = vadd.f32 %v1379_v4, %v519_v41  ;;  %v502_v51 = vmul.f32 %v1053_v48, %v501_v44  ;;  %v555_v33 = vsub.f32 %v1367_v0, %v894_v26  ;;  %v580_v34 = vadd.f32 %v1405_v17, %v1403_v16  ;;  %v890_v40 = vld [vmem:[%s450_s5 + $0x20] sm:$0xff] }
  0x77   : >> { %v526_v49 = vadd.f32 %v1381_v5, %v525_v42  ;;  %v515_v52 = vmul.f32 %v1053_v48, %v514_v45  ;;  %v509_v53 = vmul.f32 %v1053_v48, %v508_v46  ;;  %v573_v37 = vmul.f32 %v572_v32, %v554_v28 }
  0x78   : >> { %v521_v54 = vmul.f32 %v1053_v48, %v520_v47  ;;  %v528_v55 = vadd.f32 %v502_v51, %v495_v50  ;;  %v581_v39 = vmul.f32 %v580_v34, %v555_v33  ;;  %v576_v43 = vmul.f32 %v892_v24, %v451_v38 }
  0x79   : >> { %v527_v56 = vmul.f32 %v1053_v48, %v526_v49  ;;  %v564_v45 = vmul.f32 %v1393_v11, %v554_v28  ;;  %v583_v47 = vmul.f32 %v894_v26, %v890_v40  ;;  %v568_v48 = vmul.f32 %v1407_v18, %v555_v33 }
  0x7a   : >> { %v529_v57 = vadd.f32 %v521_v54, %v515_v52  ;;  %v533_v58 = vmul.f32 4.0, %v528_v55  ;;  %v544_v2 = vand.u32 2147483647, %v528_v55  ;;  %v560_v50 = vmul.f32 %v554_v28, %v1389_v9 }
  0x7c   : >> { %v530_v59 = vadd.f32 %v529_v57, %v509_v53  ;;  %v534_v61 = vmul.f32 %v533_v58, %v527_v56  ;;  %vm545_vm0 = vcmp.lt.f32.partialorder %v544_v2, 1e-30 }
  0x7d   : >> { %v546_v13 = vsel %vm545_vm0, 1e-30, %v528_v55 }
  0x7e   : >> { %v531_v60 = vsub.f32 0.0, %v530_v59 }
  0x80   : >> { %v532_v62 = vmul.f32 %v531_v60, %v531_v60 }
  0x82   : >> { %v535_v63 = vsub.f32 %v532_v62, %v534_v61 }
  0x84   : >> { %v536_v12 = vmax.f32 %v535_v63, 0.0 }
  0x86   : >> { %1054 = vrsqrt.f32 %v536_v12  ;;  %vm539_vm1 = vcmp.eq.f32.partialorder %v536_v12, inf  ;;  %v542_v15 = vand.u32 2147483648, %v536_v12  ;;  %vm541_vm2 = vcmp.eq.f32.partialorder %v536_v12, 0.0 }
  0x87   : >> { %1056 = vrcp.f32 %v546_v13 }
  0x93   : >> { %v1055_v14 = vpop.eup %1054 }
  0x94   : >> { %v538_v19 = vmul.f32 %v1055_v14, %v536_v12  ;;  %v1057_v23 = vpop.eup %1056 }
  0x96   : >> { %v540_v20 = vsel %vm539_vm1, %v536_v12, %v538_v19 }
  0x97   : >> { %v543_v21 = vsel %vm541_vm2, %v542_v15, %v540_v20 }
  0x98   : >> { %v547_v22 = vadd.f32 %v543_v21, %v531_v60 }
  0x9a   : >> { %v548_v25 = vmul.f32 -0.5, %v547_v22 }
  0x9c   : >> { %v1441_v27 = vmul.f32 %v1057_v23, %v548_v25 }
  0x9e   : >> { %v551_v29 = vsub.f32 0.0, %v1441_v27  ;;  %v556_v30 = vsub.f32 %v1369_v1, %v1441_v27  ;;  %v558_v31 = vsub.f32 %v1367_v0, %v1441_v27  ;;  %vm588_vm4 = vcmp.le.f32.partialorder %v1441_v27, 0.0 }
  0xa0   : >> { %v552_v35 = vmul.f32 %v551_v29, %v528_v55  ;;  %1058 = vrcp.f32 %v556_v30 }
  0xa1   : >> { %1060 = vrcp.f32 %v558_v31 }
  0xa2   : >> { %v553_v36 = vadd.f32 %v552_v35, %v509_v53  ;;  %v562_v53 = vmul.f32 %v1403_v16, %v555_v33 }
  0xa4   : >> { %v574_v41 = vmul.f32 %v553_v36, %v1441_v27  ;;  %v565_v42 = vsub.f32 %v553_v36, %v451_v38  ;;  %v569_v49 = vsub.f32 %v553_v36, %v890_v40 }
  0xa6   : >> { %v575_v44 = vadd.f32 %v574_v41, %v573_v37  ;;  %v582_v46 = vadd.f32 %v581_v39, %v574_v41  ;;  %v566_v52 = vadd.f32 %v565_v42, %v564_v45  ;;  %v570_v55 = vadd.f32 %v569_v49, %v568_v48 }
  0xa8   : >> { %v577_v51 = vsub.f32 %v575_v44, %v576_v43  ;;  %v584_v54 = vsub.f32 %v582_v46, %v583_v47 }
  0xad   : >> { %v1059_v56 = vpop.eup %1058 }
  0xae   : >> { %v1061_v57 = vpop.eup %1060  ;;  %v561_v58 = vmul.f32 %v1059_v56, %v560_v50  ;;  %v578_v59 = vmul.f32 %v1059_v56, %v577_v51  ;;  %v567_v60 = vmul.f32 %v1059_v56, %v566_v52 }
  0xaf   : >> { %v563_v61 = vmul.f32 %v1061_v57, %v562_v53  ;;  %v585_v62 = vmul.f32 %v1061_v57, %v584_v54  ;;  %v571_v63 = vmul.f32 %v1061_v57, %v570_v55 }
  0xb0   : >> { %v590_v2 = vsub.f32 %v561_v58, %v1389_v9  ;;  %v579_v12 = vsub.f32 %v578_v59, %v561_v58  ;;  %v612_v13 = vsub.f32 %v567_v60, %v1393_v11 }
  0xb1   : >> { %v593_v14 = vsub.f32 %v563_v61, %v1403_v16  ;;  %v586_v15 = vsub.f32 %v585_v62, %v563_v61  ;;  %v615_v19 = vsub.f32 %v571_v63, %v1407_v18 }
  0xb2   : >> { %v591_v20 = vmul.f32 %v1369_v1, %v590_v2  ;;  %v601_v21 = vsub.f32 %v579_v12, %v1391_v10  ;;  %v613_v22 = vmul.f32 %v1369_v1, %v612_v13 }
  0xb3   : >> { %v594_v9 = vmul.f32 %v593_v14, %v1367_v0  ;;  %v604_v23 = vsub.f32 %v586_v15, %v1405_v17  ;;  %v616_v11 = vmul.f32 %v615_v19, %v1367_v0 }
  0xb4   : >> { %v592_v16 = vadd.f32 %v591_v20, %v1377_v3  ;;  %v602_v18 = vmul.f32 %v1369_v1, %v601_v21  ;;  %v614_v24 = vadd.f32 %v1381_v5, %v613_v22 }
  0xb5   : >> { %v595_v10 = vadd.f32 %v1383_v6, %v594_v9  ;;  %v605_v25 = vmul.f32 %v604_v23, %v1367_v0  ;;  %v617_v26 = vadd.f32 %v1387_v8, %v616_v11 }
  0xb6   : >> { %v596_v17 = vsel %vm589_vm3, %v592_v16, %v1377_v3  ;;  %v603_v28 = vadd.f32 %v1379_v4, %v602_v18  ;;  %v618_v29 = vsel %vm589_vm3, %v614_v24, %v1381_v5 }
  0xb7   : >> { %v597_v30 = vsel %vm588_vm4, %v595_v10, %v596_v17  ;;  %v606_v31 = vadd.f32 %v1385_v7, %v605_v25  ;;  %v619_v32 = vsel %vm588_vm4, %v617_v26, %v618_v29  ;;  %442 = sbr.rel (!%p440_p1) target bundleno = 97 (0x61), region = 171 }
  0xb8   : >> { %v598_v33 = vsel %vm587_vm5, %v1383_v6, %v597_v30  ;;  %v607_v3 = vsel %vm589_vm3, %v603_v28, %v1379_v4  ;;  %v620_v5 = vsel %vm587_vm5, %v1387_v8, %v619_v32 }
  0xb9   : >> { %600 = vst [vmem:[%s599_s25] sm:$0xff] %v598_v33  ;;  %v608_v34 = vsel %vm588_vm4, %v606_v31, %v607_v3  ;;  %918 = vst [vmem:[%s599_s25 + $0x40] sm:$0xff] %v620_v5 }
  0xba   : >> { %v609_v35 = vsel %vm587_vm5, %v1385_v7, %v608_v34 }
  0xbb   : >> { %916 = vst [vmem:[%s599_s25 + $0x20] sm:$0xff] %v609_v35 }
  0xbc   : > { %s927_s10 = sshll.u32 %s1195_s19, 9  ;;  %s647_s7 = sshll.u32 %s1355_s11, 4  ;;  %s648_s7 = int_to_ptr.vmem [resolvable:$true] %s647_s7 }
  0xbd   : > { %s636_s8 = scalar_lea.hbm %s1550_s4, %s927_s10  ;;  %s1142_s6 = smov 512  }
  0xbe   : > { %968 = sst [smem:[#allocation20]] (%p1222_p9), %s1142_s6  ;;  %s1143_s0 = smov 2048  }
  0xbf   : > { %969 = sst [smem:[#allocation20 + $0x1]] (%p1222_p9), %s1143_s0  ;;  %s1144_s23 = smov 4  }
  0xc0   : > { %970 = sst [smem:[#allocation20 + $0x2]] (%p1222_p9), %s1144_s23  ;;  %s1145_s20 = smov 128  }
  0xc1   : > { %971 = sst [smem:[#allocation20 + $0x3]] (%p1222_p9), %s1145_s20  ;;  %s1146_s19 = smov 8  }
  0xc2   : > { %972 = sst [smem:[#allocation20 + $0x4]] (%p1222_p9), %s1145_s20  ;;  %s1147_s14 = smov 131072  }
  0xc3   : > { %973 = sst [smem:[#allocation20 + $0x5]] (%p1222_p9), %s1146_s19  ;;  %s1148_s13 = smov 0  }
  0xc4   : > { %974 = dma.general (%p1222_p9), %s648_s7, 1536, %s636_s8, %s624_s29, %s1147_s14, [#allocation20], %s1148_s13, 0  }
  0xc5 PF: > { %p980_p2 = scmp.ge.s32.totalorder %s1112_s18, 2  ;;  %s675_s11 = sand.u32 1, %s1100_s15  }
  0xc6   : > { %s676_s26 = scalar_lea.sflag [#allocation4], %s675_s11 }
  0xc7   : > { %p977_p3 = pnand %p980_p2, %p1226_p10 }
  0xc9   : > { %p978_p4 = pneg %p977_p3 }
  0xcb   : > { %1095 = dma.done.wait (%p978_p4), %s676_s26, 1536  }
  0xcc   : > { %1097 = vsyncadd (%p978_p4), %s676_s26, 4294965760  ;;  %p23_p5 = scmp.ge.s32.totalorder %s1199_s21, 6   ;;  %s1557_s15 = smov %s1104_s16 }
  0xcd   : > { %s1558_s16 = smov %s1108_s17  ;;  %s1559_s17 = smov %s1211_s24 }
  0xce   : > { %s1560_s18 = smov %s1199_s21  ;;  %25 = sbr.rel (!%p23_p5) target bundleno = 11 (0xb), region = 182 }
  0xd3   :  { %681 = vsyncpa [#allocation3], 1 }
  0xd4   :  { %683 = vsyncpa [#allocation3 + $0x1], 1 }
  0xd5   :  { %684 = vsyncpa [#allocation6], 1 }
  0xd6   :  { %686 = vsyncpa [#allocation6 + $0x1], 1 }
  0xd7   :  { %687 = vsyncpa [#allocation9], 1 }
  0xd8   :  { %689 = vsyncpa [#allocation9 + $0x1], 1 }
  0xd9   :  { %690 = vsyncpa [#allocation4], 1 }
  0xda   :  { %692 = vsyncpa [#allocation4 + $0x1], 1 }

</bundles_post_ra>
